<compile_context>
chip_gen: v6e
topology: v6e:2x2x1
jax: 0.10.0
libtpu: 0.0.40
codegen_flags: <defaults>
</compile_context>

<pallas_src>
import math

import jax
import jax.numpy as jnp
import numpy as np
from jax.experimental import pallas as pl
from jax.experimental.pallas import tpu as pltpu


def _shortcut_kernel(x_ref, s_ref, o_ref):
    # x_ref: (n_blk, C,  G, K)  -- flattened spatial groups, lane dim K = rows*W
    # s_ref: (K, Q)             -- one-hot fused selection (H stride + W stride
    #                              + flatten-to-lanes), Q = g * W_out
    # o_ref: (n_blk, OC, G, Q)  -- lane-dense output block
    nb, c, gb, k = x_ref.shape
    _, oc, _, q = o_ref.shape

    # Leading-dims-only reshape (minor dim untouched) -> safe on Mosaic.
    x2 = x_ref[...].reshape(nb * c * gb, k).astype(jnp.float32)

    # One matmul performs both spatial strides and the (h, w) -> lane flatten.
    # Exact: S is one-hot, so f32 accumulation just copies the selected value.
    sel = jnp.dot(x2, s_ref[...], preferred_element_type=jnp.float32)
    sel = sel.astype(o_ref.dtype).reshape(nb, c, gb, q)

    # Single store per output element: valid channels, then the zero padding.
    # OC is a non-minor dim of the block, so both stores are full (G, Q) tiles.
    o_ref[:, :c, :, :] = sel
    if oc > c:  # static python condition
        o_ref[:, c:, :, :] = jnp.zeros((nb, oc - c, gb, q), o_ref.dtype)


def _pick_group(h, h_out, w_out, stride, target_lanes=128):
    """How many output rows to flatten into one lane-dense chunk."""
    if h % stride != 0:
        # Ragged ceil(H/stride) case: one chunk spanning all of H.
        return h_out
    for g in range(1, h_out + 1):
        if h_out % g == 0 and g * w_out >= target_lanes:
            return g
    return h_out  # best we can do: whole H_out*W_out plane on lanes


def shortcut(x, stride, out_channels, *, block_bytes=8 * 1024 * 1024):
    """x: (N, C, H, W). Returns (N, out_channels, ceil(H/stride), ceil(W/stride))."""
    n, c, h, w = x.shape
    assert out_channels >= c
    h_out = -(-h // stride)  # ceil, matches x[::stride] semantics
    w_out = -(-w // stride)

    g = _pick_group(h, h_out, w_out, stride)
    groups = h_out // g          # number of lane-flattened chunks along H_out
    k_rows = h // groups         # input rows per chunk (= g*stride when divisible)
    k = k_rows * w               # input lanes per chunk
    q = g * w_out                # output lanes per chunk

    # One-hot fused selection matrix (built once on the host; fetched once).
    qi = np.arange(q)
    src = (qi // w_out) * stride * w + (qi % w_out) * stride
    sel = np.zeros((k, q), np.float32)
    sel[src, qi] = 1.0
    sel = jnp.asarray(sel)

    # Free contiguous reshape (no data movement, no transpose).
    x_view = x.reshape(n, c, groups, k)

    # Batch-block size: keep (input + output) per grid step around block_bytes.
    per_sample = (c * h * w + out_channels * h_out * w_out) * x.dtype.itemsize
    n_blk = max(1, min(n, block_bytes // max(per_sample, 1)))
    while n % n_blk:             # keep blocks even (no ragged last block)
        n_blk -= 1

    out_flat = pl.pallas_call(
        _shortcut_kernel,
        out_shape=jax.ShapeDtypeStruct((n, out_channels, groups, q), x.dtype),
        grid_spec=pltpu.PrefetchScalarGridSpec(
            num_scalar_prefetch=0,
            grid=(n // n_blk,),
            in_specs=[
                pl.BlockSpec((n_blk, c, groups, k), lambda i: (i, 0, 0, 0)),
                # Constant index_map: DMA'd once, stays VMEM-resident.
                pl.BlockSpec((k, q), lambda i: (0, 0)),
            ],
            out_specs=pl.BlockSpec(
                (n_blk, out_channels, groups, q), lambda i: (i, 0, 0, 0)
            ),
        ),
        compiler_params=pltpu.CompilerParams(dimension_semantics=("parallel",)),
    )(x_view, sel)

    # Free contiguous reshape back to NCHW output layout.
    return out_flat.reshape(n, out_channels, h_out, w_out)


def shortcut_ref(x, stride, out_channels):
    """Pure-JAX reference mirroring the PyTorch forward."""
    sub = x[:, :, ::stride, ::stride]
    n, c, h, w = sub.shape
    pad = jnp.zeros((n, out_channels - c, h, w), x.dtype)
    return jnp.concatenate([sub, pad], axis=1)


if __name__ == "__main__":
    stride = 2
    out_channels = 8

    key = jax.random.PRNGKey(0)
    x = jax.random.normal(key, (2, 4, 16, 16), dtype=jnp.float32)  # NCHW

    y = shortcut(x, stride, out_channels)
    y = jax.block_until_ready(y)

    y_ref = shortcut_ref(x, stride, out_channels)
    np.testing.assert_allclose(np.asarray(y), np.asarray(y_ref), rtol=1e-6, atol=1e-6)
    assert y.shape == (2, out_channels, 8, 8)

    print("KERNEL_OK")
</pallas_src>

<mosaic_0001>
module attributes {stable_mosaic.version = 11 : i64} {
  func.func @_shortcut_kernel(%arg0: i32, %arg1: memref<2x4x1x256xf32, #tpu.memory_space<vmem>>, %arg2: memref<256x64xf32, #tpu.memory_space<vmem>>, %arg3: memref<2x8x1x64xf32, #tpu.memory_space<vmem>>) attributes {dimension_semantics = [#tpu.dimension_semantics<parallel>], iteration_bounds = array<i64: 1>, scalar_prefetch = 0 : i64, scratch_operands = 0 : i64, tpu.core_type = #tpu.core_type<tc>, window_params = [{transform_indices = @transform_0, window_bounds = array<i64: 2, 4, 1, 256>}, {pipeline_mode = #tpu.pipeline_mode<synchronous>, transform_indices = @transform_1, window_bounds = array<i64: 256, 64>}, {transform_indices = @transform_2, window_bounds = array<i64: 2, 8, 1, 64>}]} {
    %c0 = arith.constant 0 : index
    %c0_0 = arith.constant 0 : index
    %c0_1 = arith.constant 0 : index
    %c0_2 = arith.constant 0 : index
    %0 = vector.load %arg1[%c0, %c0_0, %c0_1, %c0_2] : memref<2x4x1x256xf32, #tpu.memory_space<vmem>>, vector<2x4x1x256xf32>
    %1 = vector.shape_cast %0 : vector<2x4x1x256xf32> to vector<8x256xf32>
    %c0_3 = arith.constant 0 : index
    %c0_4 = arith.constant 0 : index
    %2 = vector.load %arg2[%c0_3, %c0_4] : memref<256x64xf32, #tpu.memory_space<vmem>>, vector<256x64xf32>
    %cst = arith.constant dense<0.000000e+00> : vector<8x64xf32>
    %3 = tpu.matmul %1, %2, %cst {dimension_numbers = #tpu.dot_dimension_numbers<[1], [0], [0], [1], [0, 0, 1, 1], [], []>} : vector<8x256xf32>, vector<256x64xf32>, vector<8x64xf32> -> vector<8x64xf32>
    %4 = vector.shape_cast %3 : vector<8x64xf32> to vector<2x4x1x64xf32>
    %c0_5 = arith.constant 0 : index
    %c0_6 = arith.constant 0 : index
    %c0_7 = arith.constant 0 : index
    %c0_8 = arith.constant 0 : index
    %5 = vector.load %arg3[%c0_5, %c0_6, %c0_7, %c0_8] : memref<2x8x1x64xf32, #tpu.memory_space<vmem>>, vector<2x4x1x64xf32>
    tpu.vector_store %arg3[%c0_5, %c0_6, %c0_7, %c0_8], %4 {strides = array<i32>} : memref<2x8x1x64xf32, #tpu.memory_space<vmem>>, vector<2x4x1x64xf32>,
    %cst_9 = arith.constant 0.000000e+00 : f32
    %6 = vector.broadcast %cst_9 : f32 to vector<2x4x1x64xf32>
    %c0_10 = arith.constant 0 : index
    %c4 = arith.constant 4 : index
    %c0_11 = arith.constant 0 : index
    %c0_12 = arith.constant 0 : index
    %7 = vector.load %arg3[%c0_10, %c4, %c0_11, %c0_12] : memref<2x8x1x64xf32, #tpu.memory_space<vmem>>, vector<2x4x1x64xf32>
    tpu.vector_store %arg3[%c0_10, %c4, %c0_11, %c0_12], %6 {strides = array<i32>} : memref<2x8x1x64xf32, #tpu.memory_space<vmem>>, vector<2x4x1x64xf32>,
    return
  }
  func.func @transform_0(%arg0: i32) -> (i32, i32, i32, i32) {
    %c0_i32 = arith.constant 0 : i32
    %c0_i32_0 = arith.constant 0 : i32
    %c0_i32_1 = arith.constant 0 : i32
    %c0_i32_2 = arith.constant 0 : i32
    return %arg0, %c0_i32, %c0_i32_0, %c0_i32_1 : i32, i32, i32, i32
  }
  func.func @transform_1(%arg0: i32) -> (i32, i32) {
    %c0_i32 = arith.constant 0 : i32
    %c0_i32_0 = arith.constant 0 : i32
    %c0_i32_1 = arith.constant 0 : i32
    return %c0_i32, %c0_i32_0 : i32, i32
  }
  func.func @transform_2(%arg0: i32) -> (i32, i32, i32, i32) {
    %c0_i32 = arith.constant 0 : i32
    %c0_i32_0 = arith.constant 0 : i32
    %c0_i32_1 = arith.constant 0 : i32
    %c0_i32_2 = arith.constant 0 : i32
    return %arg0, %c0_i32, %c0_i32_0, %c0_i32_1 : i32, i32, i32, i32
  }
}

</mosaic_0001>

<bundles_post_ra>
// kernel: tpu_custom_call.1
= control target key start
LH: loop header
LB: loop body
LE: loop exit
PB: predicated region body
PF: predicated region fallthrough
CT: control target
= control target key end

     0   :  { %v352_v5 = vmov 1966171168   ;;  %v67_v7 = vlaneseq  ;;  %s527_s0 = inlined_call_operand.vmem [shape: f32[2,4,1,256], index: 0, kind: input, shape index: {}]   ;;  %s528_s1 = inlined_call_operand.vmem [shape: f32[256,64], index: 1, kind: input, shape index: {}]   ;;  %s529_s2 = inlined_call_operand.hbm [shape: f32[2,8,1,64], index: 2, kind: output, shape index: {}]  }
   0x1   :  { %v51_v0 = vld [vmem:[%s528_s1 + $0xf8] sm:$0xff]  ;;  %v50_v2 = vld [vmem:[%s528_s1 + $0xf0] sm:$0xff]  ;;  %v49_v4 = vld [vmem:[%s528_s1 + $0xe8] sm:$0xff]  ;;  %v65_v6 = vunpack.c.l.s4 %v352_v5 }
   0x2   :  { %v35_v1 = vld [vmem:[%s528_s1 + $0x78] sm:$0xff]  ;;  %290 = vmatprep.subr.mxu0 %v51_v0  ;;  %v34_v3 = vld [vmem:[%s528_s1 + $0x70] sm:$0xff]  ;;  %v33_v8 = vld [vmem:[%s528_s1 + $0x68] sm:$0xff]  ;;  %v68_v13 = vshrl.u32 %v67_v7, 7 }
   0x3   :  { %291 = vmatpush3.msra.mxu0 %v35_v1  ;;  %v48_v9 = vld [vmem:[%s528_s1 + $0xe0] sm:$0xff]  ;;  %v47_v11 = vld [vmem:[%s528_s1 + $0xd8] sm:$0xff]  ;;  %v66_v12 = vunpack.c.0.s8 %v65_v6  ;;  %v46_v15 = vld [vmem:[%s528_s1 + $0xd0] sm:$0xff] }
   0x4   :  { %292 = vmatprep.subr.mxu0 %v50_v2  ;;  %v32_v10 = vld [vmem:[%s528_s1 + $0x60] sm:$0xff]  ;;  %v31_v14 = vld [vmem:[%s528_s1 + $0x58] sm:$0xff]  ;;  %v30_v16 = vld [vmem:[%s528_s1 + $0x50] sm:$0xff] }
   0x5   :  { %293 = vmatpush3.msra.mxu0 %v34_v3  ;;  %v45_v17 = vld [vmem:[%s528_s1 + $0xc8] sm:$0xff]  ;;  %v44_v19 = vld [vmem:[%s528_s1 + $0xc0] sm:$0xff]  ;;  %v420_v21 = vsub.s32 %v66_v12, %v68_v13 }
   0x6   :  { %294 = vmatprep.subr.mxu0 %v49_v4  ;;  %v29_v18 = vld [vmem:[%s528_s1 + $0x48] sm:$0xff]  ;;  %v12_v20 = vld [vmem:[%s527_s0] sm:$0x3]  ;;  %v13_v22 = vld [vmem:[%s527_s0 + $0x2] sm:$0x3] }
   0x7   :  { %295 = vmatpush3.msra.mxu0 %v33_v8  ;;  %v14_v23 = vld [vmem:[%s527_s0 + $0x4] sm:$0x3]  ;;  %v15_v24 = vld [vmem:[%s527_s0 + $0x6] sm:$0x3]  ;;  %v16_v25 = vld [vmem:[%s527_s0 + $0x8] sm:$0x3]  ;;  %v60_v28 = vcombine.low %v12_v20, %v13_v22 }
   0x8   :  { %296 = vmatprep.subr.mxu0 %v48_v9  ;;  %v17_v26 = vld [vmem:[%s527_s0 + $0xa] sm:$0x3]  ;;  %v18_v27 = vld [vmem:[%s527_s0 + $0xc] sm:$0x3]  ;;  %v61_v29 = vcombine.low %v14_v23, %v15_v24  ;;  %v28_v30 = vld [vmem:[%s528_s1 + $0x40] sm:$0xff] }
   0x9   :  { %297 = vmatpush3.msra.mxu0 %v32_v10  ;;  %v19_v31 = vld [vmem:[%s527_s0 + $0xe] sm:$0x3]  ;;  %v62_v32 = vcombine.low %v16_v25, %v17_v26 }
   0xa   :  { %298 = vmatprep.subr.mxu0 %v47_v11 }
   0xb   :  { %299 = vmatpush3.msra.mxu0 %v31_v14 }
   0xc   :  { %300 = vmatprep.subr.mxu0 %v46_v15 }
   0xd   :  { %301 = vmatpush3.msra.mxu0 %v30_v16 }
   0xe   :  { %302 = vmatprep.subr.mxu0 %v45_v17 }
   0xf   :  { %7 = vsyncpa [#allocation3], 0  ;;  %303 = vmatpush3.msra.mxu0 %v29_v18  ;;  %v43_v33 = vld [vmem:[%s528_s1 + $0xb8] sm:$0xff]  ;;  %v63_v34 = vcombine.low %v18_v27, %v19_v31  ;;  %v70_v35 = vrot.slane %v60_v28, %v420_v21  ;;  %v77_v36 = vrot.slane %v61_v29, %v420_v21  ;;  %v84_v38 = vrot.slane %v62_v32, %v420_v21  ;;  %v42_v39 = vld [vmem:[%s528_s1 + $0xb0] sm:$0xff] }
  0x10   :  { %304 = vmatprep.subr.mxu0 %v44_v19  ;;  %v27_v37 = vld [vmem:[%s528_s1 + $0x38] sm:$0xff]  ;;  %v26_v42 = vld [vmem:[%s528_s1 + $0x30] sm:$0xff]  ;;  %v41_v43 = vld [vmem:[%s528_s1 + $0xa8] sm:$0xff]  ;;  %vm256_vm0 = vcmask 516096   ;;  %v353_v0 = vmov 0.0  }
  0x11   :  { %305 = vmatpush3.msra.mxu0 %v28_v30  ;;  %v91_v40 = vrot.slane %v63_v34, %v420_v21  ;;  %v93_v41 = vcombine.high %v70_v35, %v77_v36  ;;  %v25_v46 = vld [vmem:[%s528_s1 + $0x28] sm:$0xff]  ;;  %v40_v47 = vld [vmem:[%s528_s1 + $0xa0] sm:$0xff]  ;;  %v92_v50 = vcombine.low %v70_v35, %v77_v36  ;;  %v39_v52 = vld [vmem:[%s528_s1 + $0x98] sm:$0xff]  ;;  %266 = vst.msk [vmem:[#allocation2 + $0x4] sm:$0x1] %vm256_vm0, %v353_v0 }
  0x12   :  { %306 = vmatprep.subr.mxu0 %v43_v33  ;;  %v24_v49 = vld [vmem:[%s528_s1 + $0x20] sm:$0xff]  ;;  %v23_v54 = vld [vmem:[%s528_s1 + $0x18] sm:$0xff]  ;;  %v38_v55 = vld [vmem:[%s528_s1 + $0x90] sm:$0xff]  ;;  %267 = vst.msk [vmem:[#allocation2 + $0x5] sm:$0x1] %vm256_vm0, %v353_v0 }
  0x13   :  { %307 = vmatpush3.msra.mxu0 %v27_v37  ;;  %v95_v44 = vcombine.high %v84_v38, %v91_v40  ;;  %v109_v45 = vrot.slane %v93_v41, %v420_v21  ;;  %v94_v51 = vcombine.low %v84_v38, %v91_v40  ;;  %v22_v56 = vld [vmem:[%s528_s1 + $0x10] sm:$0xff]  ;;  %v102_v57 = vrot.slane %v92_v50, %v420_v21  ;;  %v37_v59 = vld [vmem:[%s528_s1 + $0x88] sm:$0xff]  ;;  %v36_v61 = vld [vmem:[%s528_s1 + $0x80] sm:$0xff] }
  0x14   :  { %308 = vmatprep.subr.mxu0 %v42_v39  ;;  %v21_v60 = vld [vmem:[%s528_s1 + $0x8] sm:$0xff]  ;;  %v20_v62 = vld [vmem:[%s528_s1] sm:$0xff]  ;;  %268 = vst.msk [vmem:[#allocation2 + $0x6] sm:$0x1] %vm256_vm0, %v353_v0  ;;  %269 = vst.msk [vmem:[#allocation2 + $0x7] sm:$0x1] %vm256_vm0, %v353_v0 }
  0x15   :  { %309 = vmatpush3.msra.mxu0 %v26_v42  ;;  %v123_v48 = vrot.slane %v95_v44, %v420_v21  ;;  %v116_v58 = vrot.slane %v94_v51, %v420_v21  ;;  %270 = vst.msk [vmem:[#allocation2 + $0xc] sm:$0x1] %vm256_vm0, %v353_v0  ;;  %271 = vst.msk [vmem:[#allocation2 + $0xd] sm:$0x1] %vm256_vm0, %v353_v0  ;;  %s354_s1 = smov [#allocation2]  }
  0x16   :  { %310 = vmatprep.subr.mxu0 %v41_v43  ;;  %272 = vst.msk [vmem:[#allocation2 + $0xe] sm:$0x1] %vm256_vm0, %v353_v0  ;;  %273 = vst.msk [vmem:[#allocation2 + $0xf] sm:$0x1] %vm256_vm0, %v353_v0  ;;  %s279_s4 = sshll.u32 %s354_s1, 4  ;;  %s280_s4 = int_to_ptr.vmem [resolvable:$true] %s279_s4 }
  0x17   :  { %311 = vmatpush3.msra.mxu0 %v25_v46  ;;  %v125_v53 = vcombine.low %v109_v45, %v123_v48  ;;  %v124_v63 = vcombine.low %v102_v57, %v116_v58  ;;  %s330_s0 = scalar_lea.vmem %s280_s4, 256  ;;  %p335_p1 = scmp.lt.s32.totalorder %s280_s4, %s280_s4 }
  0x18   :  { %312 = vmatprep.subr.mxu0 %v40_v47  ;;  %p331_p0 = scmp.ne.s32.totalorder %s280_s4, %s330_s0  ;;  %p336_p2 = scmp.lt.s32.totalorder %s330_s0, %s330_s0 }
  0x19   :  { %313 = vmatpush3.msra.mxu0 %v24_v49  ;;  %192 = vmatprep.mubr.f32.mxu0 %v125_v53 }
  0x1a   :  { %314 = vmatprep.subr.mxu0 %v39_v52  ;;  %p337_p3 = por %p336_p2, %p335_p1 }
  0x1b   :  { %315 = vmatpush3.msra.mxu0 %v23_v54 }
  0x1c   :  { %316 = vmatprep.subr.mxu0 %v38_v55  ;;  %p338_p4 = pnand %p337_p3, %p331_p0 }
  0x1d   :  { %317 = vmatpush3.msra.mxu0 %v22_v56 }
  0x1e   :  { %318 = vmatprep.subr.mxu0 %v37_v59 }
  0x1f   :  { %319 = vmatpush3.msra.mxu0 %v21_v60 }
  0x20   :  { %320 = vmatprep.subr.mxu0 %v36_v61 }
  0x21   :  { %321 = vmatpush3.msra.mxu0 %v20_v62 }
  0x22   :  { %193 = vmatmul.mubr.f32.vlgmr.msra.gmra.mxu0 %v124_v63 }
  0xe2   :  { %v322_v1 = vpop.f32.mrf.mxu0 }
  0xe4   :  { %v323_v2 = vpop.f32.mrf.mxu0 }
  0xe5   :  { %v324_v3 = vadd.f32 %v323_v2, %v322_v1 }
  0xe7   :  { %v199_v4 = vcombine.high %v324_v3, %v324_v3  ;;  %v206_v5 = vrot.slane %v324_v3, %v420_v21 }
  0xe9   :  { %v213_v6 = vrot.slane %v199_v4, %v420_v21  ;;  %v214_v7 = vcombine.high %v206_v5, %v206_v5  ;;  %v222_v8 = vrot.slane %v206_v5, %v420_v21 }
  0xeb   :  { %v215_v9 = vcombine.high %v213_v6, %v213_v6  ;;  %v229_v10 = vrot.slane %v213_v6, %v420_v21  ;;  %v236_v11 = vrot.slane %v214_v7, %v420_v21  ;;  %v244_v12 = vcombine.high %v222_v8, %v222_v8  ;;  %257 = vst.msk [vmem:[#allocation2] sm:$0x1] %vm256_vm0, %v222_v8 }
  0xed   :  { %v243_v13 = vrot.slane %v215_v9, %v420_v21  ;;  %v245_v14 = vcombine.high %v229_v10, %v229_v10  ;;  %v246_v15 = vcombine.high %v236_v11, %v236_v11  ;;  %258 = vst.msk [vmem:[#allocation2 + $0x1] sm:$0x1] %vm256_vm0, %v236_v11  ;;  %259 = vst.msk [vmem:[#allocation2 + $0x2] sm:$0x1] %vm256_vm0, %v244_v12 }
  0xee   :  { %261 = vst.msk [vmem:[#allocation2 + $0x8] sm:$0x1] %vm256_vm0, %v229_v10 }
  0xef   :  { %v247_v16 = vcombine.high %v243_v13, %v243_v13  ;;  %260 = vst.msk [vmem:[#allocation2 + $0x3] sm:$0x1] %vm256_vm0, %v246_v15  ;;  %262 = vst.msk [vmem:[#allocation2 + $0x9] sm:$0x1] %vm256_vm0, %v243_v13 }
  0xf0   :  { %263 = vst.msk [vmem:[#allocation2 + $0xa] sm:$0x1] %vm256_vm0, %v245_v14 }
  0xf1   :  { %264 = vst.msk [vmem:[#allocation2 + $0xb] sm:$0x1] %vm256_vm0, %v247_v16 }
  0xf2   :  { %341 = shalt.err (!%p338_p4)
}
  0xf3   :  { %s355_s5 = smov 16   ;;  %s356_s6 = smov 1  }
  0xf4   :  { %285 = dma.vmem_to_hbm [thread:$0]  %s280_s4, 256, %s529_s2, [#allocation3], %s355_s5, %s355_s5, %s356_s6  }
  0xf5   :  { %350 = dma.done.wait [#allocation3], 256  }
  0xf6   :  { %351 = vsyncadd [#allocation3], 4294967040 }
  0xf7   :  { %289 = vsyncpa [#allocation3], 1 }

</bundles_post_ra>
